<compile_context>
chip_gen: v7x
topology: tpu7x:2x2x1
jax: 0.10.0
libtpu: 0.0.40
codegen_flags: <defaults>
</compile_context>

<pallas_src>
import functools

import jax
import jax.numpy as jnp
from jax.experimental import pallas as pl
from jax.experimental.pallas import tpu as pltpu


def _round_up(x, m):
    return (x + m - 1) // m * m


# ---------------------------------------------------------------------------
# Kernels
# ---------------------------------------------------------------------------
def _bigram_logits_kernel(idx_ref, table_ref, logits_ref):
    """Embedding lookup only (one-hot @ table on the MXU) for one row tile."""
    tile_n, v_pad = logits_ref.shape
    ids = idx_ref[...]                                            # (tile_n, 1) i32
    col = jax.lax.broadcasted_iota(jnp.int32, (tile_n, v_pad), 1)
    onehot = (col == ids).astype(jnp.float32)                     # (tile_n, v_pad)
    logits = jnp.dot(onehot, table_ref[...],
                     preferred_element_type=jnp.float32)
    logits_ref[...] = logits.astype(logits_ref.dtype)


def _bigram_loss_kernel(idx_ref, tgt_ref, table_ref, logits_ref, loss_ref,
                        *, n_valid, vocab):
    """Embedding lookup + logits writeback + per-tile cross-entropy sum."""
    tile_n, v_pad = logits_ref.shape
    i = pl.program_id(0)

    ids = idx_ref[...]                                            # (tile_n, 1)
    col = jax.lax.broadcasted_iota(jnp.int32, (tile_n, v_pad), 1)

    onehot = (col == ids).astype(jnp.float32)
    logits = jnp.dot(onehot, table_ref[...],
                     preferred_element_type=jnp.float32)          # (tile_n, v_pad)
    logits_ref[...] = logits

    # Cross-entropy over the *real* vocab lanes only.
    lane_valid = col < vocab
    masked = jnp.where(lane_valid, logits, -jnp.inf)
    m = jnp.max(masked, axis=-1, keepdims=True)                   # (tile_n, 1)
    lse = m + jnp.log(jnp.sum(jnp.exp(masked - m), axis=-1, keepdims=True))

    tgts = tgt_ref[...]                                           # (tile_n, 1)
    picked = jnp.sum(jnp.where(col == tgts, logits, 0.0),
                     axis=-1, keepdims=True)                      # (tile_n, 1)

    row = jax.lax.broadcasted_iota(jnp.int32, (tile_n, 1), 0) + i * tile_n
    per_row = jnp.where(row < n_valid, lse - picked, 0.0)

    loss_ref[...] = jnp.broadcast_to(jnp.sum(per_row), loss_ref.shape)


def _bigram_loss_only_kernel(idx_ref, tgt_ref, table_t_ref, loss_ref,
                             *, n_valid, vocab):
    """Loss-only fast path: lane-dense ids, transposed math, no logits store.

    idx/tgt blocks are (1, tile_n) (lane-dense), the table is passed
    *transposed* so logits_T = table_T @ onehot_T is a standard-orientation
    MXU matmul.  All reductions run over the vocab (sublane) axis.
    """
    v_pad = table_t_ref.shape[0]
    tile_n = idx_ref.shape[1]
    i = pl.program_id(0)

    ids = idx_ref[...]                                            # (1, tile_n)
    tgts = tgt_ref[...]                                           # (1, tile_n)
    vrow = jax.lax.broadcasted_iota(jnp.int32, (v_pad, tile_n), 0)

    onehot_t = (vrow == ids).astype(jnp.float32)                  # (v_pad, tile_n)
    logits_t = jnp.dot(table_t_ref[...], onehot_t,
                       preferred_element_type=jnp.float32)        # (v_pad, tile_n)

    masked = jnp.where(vrow < vocab, logits_t, -jnp.inf)
    m = jnp.max(masked, axis=0, keepdims=True)                    # (1, tile_n)
    lse = m + jnp.log(jnp.sum(jnp.exp(masked - m), axis=0, keepdims=True))

    picked = jnp.sum(jnp.where(vrow == tgts, logits_t, 0.0),
                     axis=0, keepdims=True)                       # (1, tile_n)

    lane = jax.lax.broadcasted_iota(jnp.int32, (1, tile_n), 1) + i * tile_n
    per_row = jnp.where(lane < n_valid, lse - picked, 0.0)

    loss_ref[...] = jnp.broadcast_to(jnp.sum(per_row), loss_ref.shape)


# ---------------------------------------------------------------------------
# Wrappers
# ---------------------------------------------------------------------------
def pad_tables(table, v_pad=None):
    """Zero-pad the (V, V) embedding table (and its transpose) to v_pad lanes.

    For decode loops, call this once at "model init" and pass the result via
    `padded_tables=` so the padding ops are hoisted out of the per-token path.
    """
    V = table.shape[0]
    if v_pad is None:
        v_pad = _round_up(V, 128)
    tab = table.astype(jnp.float32)
    table_p = jnp.zeros((v_pad, v_pad), jnp.float32).at[:V, :V].set(tab)
    table_tp = jnp.zeros((v_pad, v_pad), jnp.float32).at[:V, :V].set(tab.T)
    return table_p, table_tp


def bigram_forward(idx, table, targets=None, *, tile_n=2048, loss_only=False,
                   slice_logits=True, logits_dtype=jnp.float32,
                   padded_tables=None):
    """Pallas equivalent of BigramLanguageMode.forward.

    idx:     (B, T) integer token ids
    table:   (V, V) float32 embedding table (nn.Embedding weight)
    targets: (B, T) integer token ids or None
    returns: (logits, loss).  Matching PyTorch: logits is (B, T, V) when
             targets is None, else (B*T, V).  With slice_logits=False the
             padded (n_pad, v_pad) logits are returned instead (cheaper;
             slice at the consumer).  With loss_only=True (and targets given)
             no logits are produced at all and (None, loss) is returned.
    """
    B, T = idx.shape
    V = table.shape[0]
    N = B * T
    v_pad = _round_up(V, 128)

    if padded_tables is None:
        padded_tables = pad_tables(table, v_pad)
    table_p, table_tp = padded_tables

    # 32 MiB scoped VMEM keeps the same tile sizes valid on v7x (64 MiB
    # physical); on v5e/v6e this could be raised toward 64 MiB for bigger tiles.
    compiler_params = pltpu.CompilerParams(
        dimension_semantics=("parallel",),
        vmem_limit_bytes=32 * 1024 * 1024,
    )

    # ----------------------- loss-only fast path ---------------------------
    if targets is not None and loss_only:
        # Lane-dense ids: block last dim must be a multiple of 128 (or full).
        tl = _round_up(min(tile_n, N), 128)
        num_tiles = -(-N // tl)
        n_pad = num_tiles * tl

        idx_flat = jnp.zeros((1, n_pad), jnp.int32).at[0, :N].set(
            idx.reshape(N).astype(jnp.int32))
        tgt_flat = jnp.zeros((1, n_pad), jnp.int32).at[0, :N].set(
            targets.reshape(N).astype(jnp.int32))

        kernel = functools.partial(_bigram_loss_only_kernel, n_valid=N, vocab=V)
        loss_parts = pl.pallas_call(
            kernel,
            out_shape=jax.ShapeDtypeStruct((num_tiles * 8, 128), jnp.float32),
            grid=(num_tiles,),
            in_specs=[
                pl.BlockSpec((1, tl), lambda i: (0, i)),            # idx (lane-dense)
                pl.BlockSpec((1, tl), lambda i: (0, i)),            # targets
                pl.BlockSpec((v_pad, v_pad), lambda i: (0, 0)),     # table^T (resident)
            ],
            out_specs=pl.BlockSpec((8, 128), lambda i: (i, 0)),      # per-tile loss
            compiler_params=compiler_params,
        )(idx_flat, tgt_flat, table_tp)

        loss = jnp.sum(loss_parts.reshape(num_tiles, 8, 128)[:, 0, 0]) / N
        return None, loss

    # ----------------------- logits-producing paths ------------------------
    tl = _round_up(min(tile_n, N), 8)            # correctness fix: always 8-aligned
    num_tiles = -(-N // tl)
    n_pad = num_tiles * tl

    idx_flat = jnp.zeros((n_pad, 1), jnp.int32).at[:N, 0].set(
        idx.reshape(N).astype(jnp.int32))

    if targets is None:
        # Inference path (generate()): embedding lookup only, no CE work.
        logits_pad = pl.pallas_call(
            _bigram_logits_kernel,
            out_shape=jax.ShapeDtypeStruct((n_pad, v_pad), logits_dtype),
            grid=(num_tiles,),
            in_specs=[
                pl.BlockSpec((tl, 1), lambda i: (i, 0)),            # idx tile
                pl.BlockSpec((v_pad, v_pad), lambda i: (0, 0)),     # table (resident)
            ],
            out_specs=pl.BlockSpec((tl, v_pad), lambda i: (i, 0)),
            compiler_params=compiler_params,
        )(idx_flat, table_p)
        if slice_logits:
            return logits_pad[:N, :V].reshape(B, T, V), None
        return logits_pad, None

    tgt_flat = jnp.zeros((n_pad, 1), jnp.int32).at[:N, 0].set(
        targets.reshape(N).astype(jnp.int32))

    kernel = functools.partial(_bigram_loss_kernel, n_valid=N, vocab=V)
    logits_pad, loss_parts = pl.pallas_call(
        kernel,
        out_shape=(
            jax.ShapeDtypeStruct((n_pad, v_pad), jnp.float32),
            jax.ShapeDtypeStruct((num_tiles * 8, 128), jnp.float32),
        ),
        grid=(num_tiles,),
        in_specs=[
            pl.BlockSpec((tl, 1), lambda i: (i, 0)),                # idx tile
            pl.BlockSpec((tl, 1), lambda i: (i, 0)),                # target tile
            pl.BlockSpec((v_pad, v_pad), lambda i: (0, 0)),         # table (resident)
        ],
        out_specs=(
            pl.BlockSpec((tl, v_pad), lambda i: (i, 0)),            # logits tile
            pl.BlockSpec((8, 128), lambda i: (i, 0)),               # per-tile loss
        ),
        compiler_params=compiler_params,
    )(idx_flat, tgt_flat, table_p)

    loss = jnp.sum(loss_parts.reshape(num_tiles, 8, 128)[:, 0, 0]) / N
    if slice_logits:
        # PyTorch returns logits already .view(B*T, C)'d when targets are given.
        return logits_pad[:N, :V], loss
    return logits_pad, loss

# TODO(synk): generate()'s autoregressive multinomial-sampling loop stays a
# host-side loop around bigram_forward(idx, ..., targets=None); not a kernel.


# ---------------------------------------------------------------------------
# Reference + tests
# ---------------------------------------------------------------------------
def _reference(idx, table, targets):
    logits = table[idx]                           # (B, T, V)
    B, T, V = logits.shape
    lf = logits.reshape(B * T, V)
    tf = targets.reshape(B * T)
    lse = jax.nn.logsumexp(lf, axis=-1)
    picked = jnp.take_along_axis(lf, tf[:, None], axis=-1)[:, 0]
    return lf, jnp.mean(lse - picked)


if __name__ == "__main__":
    key = jax.random.PRNGKey(0)
    k_tab, k_idx, k_tgt, k_idx2, k_tgt2, k_idx3, k_tgt3 = jax.random.split(key, 7)

    vocab_size = 65            # e.g. tiny-shakespeare char vocab
    B, T = 2, 8

    table = jax.random.normal(k_tab, (vocab_size, vocab_size), dtype=jnp.float32)
    idx = jax.random.randint(k_idx, (B, T), 0, vocab_size, dtype=jnp.int32)
    targets = jax.random.randint(k_tgt, (B, T), 0, vocab_size, dtype=jnp.int32)
    padded = pad_tables(table)   # hoisted table padding (item 9)

    ref_logits, ref_loss = _reference(idx, table, targets)

    # 1) Training path (logits + loss), single tile.
    logits, loss = bigram_forward(idx, table, targets, padded_tables=padded)
    jax.block_until_ready((logits, loss))
    assert logits.shape == (B * T, vocab_size)
    assert jnp.allclose(logits, ref_logits, atol=1e-4, rtol=1e-4)
    assert jnp.allclose(loss, ref_loss, atol=1e-4, rtol=1e-4)

    # 2) Loss-only fast path (no logits writeback), single tile.
    none_logits, loss_fast = bigram_forward(idx, table, targets, loss_only=True,
                                            padded_tables=padded)
    jax.block_until_ready(loss_fast)
    assert none_logits is None
    assert jnp.allclose(loss_fast, ref_loss, atol=1e-4, rtol=1e-4)

    # 3) Multi-tile training path with row padding (N=15, tile=8 -> 2 tiles).
    B2, T2 = 3, 5
    idx2 = jax.random.randint(k_idx2, (B2, T2), 0, vocab_size, dtype=jnp.int32)
    tgt2 = jax.random.randint(k_tgt2, (B2, T2), 0, vocab_size, dtype=jnp.int32)
    logits2, loss2 = bigram_forward(idx2, table, tgt2, tile_n=8)
    jax.block_until_ready((logits2, loss2))
    ref_logits2, ref_loss2 = _reference(idx2, table, tgt2)
    assert jnp.allclose(logits2, ref_logits2, atol=1e-4, rtol=1e-4)
    assert jnp.allclose(loss2, ref_loss2, atol=1e-4, rtol=1e-4)

    # 4) Multi-tile loss-only path (N=256, tile=128 -> 2 lane-dense tiles).
    B3, T3 = 4, 64
    idx3 = jax.random.randint(k_idx3, (B3, T3), 0, vocab_size, dtype=jnp.int32)
    tgt3 = jax.random.randint(k_tgt3, (B3, T3), 0, vocab_size, dtype=jnp.int32)
    _, loss3 = bigram_forward(idx3, table, tgt3, tile_n=128, loss_only=True)
    jax.block_until_ready(loss3)
    _, ref_loss3 = _reference(idx3, table, tgt3)
    assert jnp.allclose(loss3, ref_loss3, atol=1e-4, rtol=1e-4)

    # 5) Inference path (targets=None, like generate()): logits only, loss None.
    logits_only, none_loss = bigram_forward(idx, table, None, padded_tables=padded)
    jax.block_until_ready(logits_only)
    assert none_loss is None
    assert logits_only.shape == (B, T, vocab_size)
    assert jnp.allclose(logits_only.reshape(B * T, vocab_size), ref_logits,
                        atol=1e-4, rtol=1e-4)

    # 6) Inference path without the wrapper-side [:N,:V] slice (padded logits).
    logits_padded, _ = bigram_forward(idx, table, None, slice_logits=False,
                                      padded_tables=padded)
    jax.block_until_ready(logits_padded)
    assert jnp.allclose(logits_padded[:B * T, :vocab_size], ref_logits,
                        atol=1e-4, rtol=1e-4)

    print("KERNEL_OK")
</pallas_src>

<mosaic_0001>
module attributes {stable_mosaic.version = 11 : i64} {
  func.func @_bigram_loss_kernel(%arg0: i32, %arg1: memref<16x1xi32, #tpu.memory_space<vmem>>, %arg2: memref<16x1xi32, #tpu.memory_space<vmem>>, %arg3: memref<128x128xf32, #tpu.memory_space<vmem>>, %arg4: memref<16x128xf32, #tpu.memory_space<vmem>>, %arg5: memref<8x128xf32, #tpu.memory_space<vmem>>) attributes {dimension_semantics = [#tpu.dimension_semantics<parallel>], iteration_bounds = array<i64: 1>, scalar_prefetch = 0 : i64, scratch_operands = 0 : i64, tpu.core_type = #tpu.core_type<tc>, window_params = [{transform_indices = @transform_0, window_bounds = array<i64: 16, 1>}, {transform_indices = @transform_1, window_bounds = array<i64: 16, 1>}, {pipeline_mode = #tpu.pipeline_mode<synchronous>, transform_indices = @transform_2, window_bounds = array<i64: 128, 128>}, {transform_indices = @transform_3, window_bounds = array<i64: 16, 128>}, {transform_indices = @transform_4, window_bounds = array<i64: 8, 128>}]} {
    %c0 = arith.constant 0 : index
    %c0_0 = arith.constant 0 : index
    %0 = vector.load %arg1[%c0, %c0_0] : memref<16x1xi32, #tpu.memory_space<vmem>>, vector<16x1xi32>
    %1 = tpu.iota {dimensions = array<i32: 1>} : vector<16x128xi32>
    %2 = vector.broadcast %0 : vector<16x1xi32> to vector<16x128xi32>
    %3 = arith.cmpi eq, %1, %2 : vector<16x128xi32>
    %4 = arith.extui %3 : vector<16x128xi1> to vector<16x128xi32>
    %5 = arith.sitofp %4 : vector<16x128xi32> to vector<16x128xf32>
    %c0_1 = arith.constant 0 : index
    %c0_2 = arith.constant 0 : index
    %6 = vector.load %arg3[%c0_1, %c0_2] : memref<128x128xf32, #tpu.memory_space<vmem>>, vector<128x128xf32>
    %cst = arith.constant dense<0.000000e+00> : vector<16x128xf32>
    %7 = tpu.matmul %5, %6, %cst {dimension_numbers = #tpu.dot_dimension_numbers<[1], [0], [0], [1], [0, 0, 1, 1], [], []>} : vector<16x128xf32>, vector<128x128xf32>, vector<16x128xf32> -> vector<16x128xf32>
    %c0_3 = arith.constant 0 : index
    %c0_4 = arith.constant 0 : index
    %8 = vector.load %arg4[%c0_3, %c0_4] : memref<16x128xf32, #tpu.memory_space<vmem>>, vector<16x128xf32>
    tpu.vector_store %arg4[%c0_3, %c0_4], %7 {strides = array<i32>} : memref<16x128xf32, #tpu.memory_space<vmem>>, vector<16x128xf32>,
    %c65_i32 = arith.constant 65 : i32
    %9 = vector.broadcast %c65_i32 : i32 to vector<16x128xi32>
    %10 = arith.cmpi slt, %1, %9 : vector<16x128xi32>
    %cst_5 = arith.constant 0xFF800000 : f32
    %11 = vector.broadcast %cst_5 : f32 to vector<16x128xf32>
    %12 = arith.select %10, %7, %11 : vector<16x128xi1>, vector<16x128xf32>
    %cst_6 = arith.constant dense<0xFF800000> : vector<16xf32>
    %13 = vector.multi_reduction <maximumf>, %12, %cst_6 [1] : vector<16x128xf32> to vector<16xf32>
    %14 = vector.shape_cast %13 : vector<16xf32> to vector<16x1xf32>
    %15 = vector.broadcast %14 : vector<16x1xf32> to vector<16x128xf32>
    %16 = arith.subf %12, %15 : vector<16x128xf32>
    %17 = math.exp %16 : vector<16x128xf32>
    %cst_7 = arith.constant dense<0.000000e+00> : vector<16xf32>
    %18 = vector.multi_reduction <add>, %17, %cst_7 [1] : vector<16x128xf32> to vector<16xf32>
    %19 = vector.shape_cast %18 : vector<16xf32> to vector<16x1xf32>
    %20 = math.log %19 : vector<16x1xf32>
    %21 = arith.addf %14, %20 : vector<16x1xf32>
    %c0_8 = arith.constant 0 : index
    %c0_9 = arith.constant 0 : index
    %22 = vector.load %arg2[%c0_8, %c0_9] : memref<16x1xi32, #tpu.memory_space<vmem>>, vector<16x1xi32>
    %23 = vector.broadcast %22 : vector<16x1xi32> to vector<16x128xi32>
    %24 = arith.cmpi eq, %1, %23 : vector<16x128xi32>
    %cst_10 = arith.constant 0.000000e+00 : f32
    %25 = vector.broadcast %cst_10 : f32 to vector<16x128xf32>
    %26 = arith.select %24, %7, %25 : vector<16x128xi1>, vector<16x128xf32>
    %cst_11 = arith.constant dense<0.000000e+00> : vector<16xf32>
    %27 = vector.multi_reduction <add>, %26, %cst_11 [1] : vector<16x128xf32> to vector<16xf32>
    %28 = vector.shape_cast %27 : vector<16xf32> to vector<16x1xf32>
    %29 = tpu.iota {dimensions = array<i32: 0>} : vector<16x1xi32>
    %c16_i32 = arith.constant 16 : i32
    %30 = arith.muli %arg0, %c16_i32 : i32
    %31 = vector.broadcast %30 : i32 to vector<16x1xi32>
    %32 = arith.addi %29, %31 : vector<16x1xi32>
    %c16_i32_12 = arith.constant 16 : i32
    %33 = vector.broadcast %c16_i32_12 : i32 to vector<16x1xi32>
    %34 = arith.cmpi slt, %32, %33 : vector<16x1xi32>
    %35 = arith.subf %21, %28 : vector<16x1xf32>
    %cst_13 = arith.constant 0.000000e+00 : f32
    %36 = vector.broadcast %cst_13 : f32 to vector<16x1xf32>
    %37 = arith.select %34, %35, %36 : vector<16x1xi1>, vector<16x1xf32>
    %38 = vector.shape_cast %37 : vector<16x1xf32> to vector<1x16x1xf32>
    %cst_14 = arith.constant dense<0.000000e+00> : vector<1xf32>
    %39 = vector.multi_reduction <add>, %38, %cst_14 [1, 2] : vector<1x16x1xf32> to vector<1xf32>
    %40 = vector.shape_cast %39 : vector<1xf32> to vector<1x1x1xf32>
    %41 = vector.extract %40[0, 0, 0] : f32 from vector<1x1x1xf32>
    %42 = vector.broadcast %41 : f32 to vector<8x128xf32>
    %c0_15 = arith.constant 0 : index
    %c0_16 = arith.constant 0 : index
    %43 = vector.load %arg5[%c0_15, %c0_16] : memref<8x128xf32, #tpu.memory_space<vmem>>, vector<8x128xf32>
    tpu.vector_store %arg5[%c0_15, %c0_16], %42 {strides = array<i32>} : memref<8x128xf32, #tpu.memory_space<vmem>>, vector<8x128xf32>,
    return
  }
  func.func @transform_0(%arg0: i32) -> (i32, i32) {
    %c0_i32 = arith.constant 0 : i32
    %c0_i32_0 = arith.constant 0 : i32
    return %arg0, %c0_i32 : i32, i32
  }
  func.func @transform_1(%arg0: i32) -> (i32, i32) {
    %c0_i32 = arith.constant 0 : i32
    %c0_i32_0 = arith.constant 0 : i32
    return %arg0, %c0_i32 : i32, i32
  }
  func.func @transform_2(%arg0: i32) -> (i32, i32) {
    %c0_i32 = arith.constant 0 : i32
    %c0_i32_0 = arith.constant 0 : i32
    %c0_i32_1 = arith.constant 0 : i32
    return %c0_i32, %c0_i32_0 : i32, i32
  }
  func.func @transform_3(%arg0: i32) -> (i32, i32) {
    %c0_i32 = arith.constant 0 : i32
    %c0_i32_0 = arith.constant 0 : i32
    return %arg0, %c0_i32 : i32, i32
  }
  func.func @transform_4(%arg0: i32) -> (i32, i32) {
    %c0_i32 = arith.constant 0 : i32
    %c0_i32_0 = arith.constant 0 : i32
    return %arg0, %c0_i32 : i32, i32
  }
}

</mosaic_0001>

<bundles_post_ra>
// kernel: tpu_custom_call.1
= control target key start
LH: loop header
LB: loop body
LE: loop exit
PB: predicated region body
PF: predicated region fallthrough
CT: control target
= control target key end

     0   :  { %10 = vsyncpa [#allocation3], 0  ;;  %s505_s0 = inlined_call_operand.vmem [shape: s32[16,1], index: 0, kind: input, shape index: {}]   ;;  %s506_s1 = inlined_call_operand.vmem [shape: s32[16,1], index: 1, kind: input, shape index: {}]   ;;  %s507_s2 = inlined_call_operand.hbm [shape: f32[128,128], index: 2, kind: input, shape index: {}]   ;;  %s508_s3 = inlined_call_operand.hbm [shape: f32[16,128], index: 3, kind: output, shape index: {0}]   ;;  %s509_s4 = inlined_call_operand.hbm [shape: f32[8,128], index: 4, kind: output, shape index: {1}]  }
   0x1   :  { %11 = vsyncpa [#allocation4], 0 }
   0x2   :  { %12 = vsyncpa [#allocation7], 0  ;;  %s419_s15 = smov [#allocation2]   ;;  %s347_s19 = scalar_lea.hbm %s507_s2, 2048 }
   0x3   :  { %s22_s16 = sshll.u32 %s419_s15, 4  ;;  %p348_p0 = scmp.ne.s32.totalorder %s507_s2, %s347_s19  ;;  %s23_s16 = int_to_ptr.vmem [resolvable:$true] %s22_s16 }
   0x4   :  { %p351_p1 = scmp.lt.u32.totalorder %s347_s19, %s507_s2 }
   0x6   :  { %p353_p2 = pnand %p351_p1, %p348_p0 }
   0x8   :  { %356 = shalt.err (!%p353_p2)
}
   0x9   :  { %s357_s24 = scalar_lea.vmem %s23_s16, 2048  ;;  %p362_p4 = scmp.lt.s32.totalorder %s23_s16, %s23_s16 }
   0xa   :  { %p358_p3 = scmp.ne.s32.totalorder %s23_s16, %s357_s24  ;;  %p363_p5 = scmp.lt.s32.totalorder %s357_s24, %s357_s24 }
   0xc   :  { %p364_p6 = por %p363_p5, %p362_p4 }
   0xe   :  { %p365_p7 = pnand %p364_p6, %p358_p3 }
  0x10   :  { %368 = shalt.err (!%p365_p7)
}
  0x11   :  { %s420_s25 = smov 128   ;;  %s421_s26 = smov 8  }
  0x12   :  { %28 = dma.hbm_to_vmem [thread:$0]  %s507_s2, 2048, %s23_s16, [#allocation3], %s420_s25, %s420_s25, %s421_s26  }
  0x13   :  { %413 = dma.done.wait [#allocation3], 2048  }
  0x14   :  { %414 = vsyncadd [#allocation3], 4294965248  ;;  %v422_v0 = vmov 0   ;;  %v32_v1 = vld [vmem:[%s505_s0] sm:$0xff]  ;;  %v49_v3 = vld [vmem:[#allocation2 + $0x8] sm:$0xff]  ;;  %v34_v28 = vlaneseq  ;;  %v423_v31 = vmov 1.0  }
  0x15   :  { %337 = vset.pattern.permute.xlu0 %v422_v0  ;;  %338 = vset.pattern.permute.xlu1 %v422_v0  ;;  %v48_v2 = vld [vmem:[#allocation2] sm:$0xff]  ;;  %v50_v4 = vld [vmem:[#allocation2 + $0x10] sm:$0xff]  ;;  %v33_v5 = vld [vmem:[%s505_s0 + $0x8] sm:$0xff]  ;;  %vm193_vm5 = vcmask 7168  }
  0x16   :  { %37 = vperm.xlu0 %337, %v32_v1   ;;  %v296_v6 = vpack.c.bf16 %v49_v3, %v48_v2  ;;  %v51_v7 = vld [vmem:[#allocation2 + $0x18] sm:$0xff]  ;;  %v52_v9 = vld [vmem:[#allocation2 + $0x20] sm:$0xff]  ;;  %v53_v10 = vld [vmem:[#allocation2 + $0x28] sm:$0xff]  ;;  %v35_v29 = vand.u32 127, %v34_v28 }
  0x17   :  { %v300_v8 = vpack.c.bf16 %v51_v7, %v50_v4  ;;  %v164_v11 = vld [vmem:[%s506_s1] sm:$0xff]  ;;  %v304_v12 = vpack.c.bf16 %v53_v10, %v52_v9  ;;  %v54_v13 = vld [vmem:[#allocation2 + $0x30] sm:$0xff]  ;;  %v55_v14 = vld [vmem:[#allocation2 + $0x38] sm:$0xff] }
  0x18   :  { %297 = vmatprep.subr.bf16.mxu0 %v296_v6  ;;  %v308_v15 = vpack.c.bf16 %v55_v14, %v54_v13  ;;  %v56_v16 = vld [vmem:[#allocation2 + $0x40] sm:$0xff]  ;;  %v57_v17 = vld [vmem:[#allocation2 + $0x48] sm:$0xff]  ;;  %v58_v19 = vld [vmem:[#allocation2 + $0x50] sm:$0xff]  ;;  %vm141_vm2 = vcmp.lt.s32.totalorder %v35_v29, 65 }
  0x19   :  { %299 = vmatpush3.bf16.msra.mxu0 %v296_v6  ;;  %v312_v18 = vpack.c.bf16 %v57_v17, %v56_v16  ;;  %v59_v20 = vld [vmem:[#allocation2 + $0x58] sm:$0xff]  ;;  %v60_v22 = vld [vmem:[#allocation2 + $0x60] sm:$0xff]  ;;  %v61_v23 = vld [vmem:[#allocation2 + $0x68] sm:$0xff] }
  0x1a   :  { %40 = vperm.xlu0 %337, %v33_v5   ;;  %301 = vmatprep.subr.bf16.mxu0 %v300_v8  ;;  %v316_v21 = vpack.c.bf16 %v59_v20, %v58_v19  ;;  %v320_v24 = vpack.c.bf16 %v61_v23, %v60_v22  ;;  %v62_v25 = vld [vmem:[#allocation2 + $0x70] sm:$0xff]  ;;  %v63_v26 = vld [vmem:[#allocation2 + $0x78] sm:$0xff]  ;;  %v165_v37 = vld [vmem:[%s506_s1 + $0x8] sm:$0xff]  ;;  %s424_s1 = smov [#allocation5]  }
  0x1b   :  { %v324_v27 = vpack.c.bf16 %v63_v26, %v62_v25  ;;  %s213_s9 = sshll.u32 %s424_s1, 4  ;;  %s214_s9 = int_to_ptr.vmem [resolvable:$true] %s213_s9 }
  0x1c   :  { %s369_s10 = scalar_lea.vmem %s214_s9, 256  ;;  %p374_p9 = scmp.lt.s32.totalorder %s214_s9, %s214_s9 }
  0x1d   :  { %303 = vmatpush3.bf16.msra.mxu0 %v300_v8  ;;  %p370_p8 = scmp.ne.s32.totalorder %s214_s9, %s369_s10  ;;  %p375_p10 = scmp.lt.s32.totalorder %s369_s10, %s369_s10 }
  0x1e   :  { %167 = vperm.xlu0 %337, %v164_v11   ;;  %305 = vmatprep.subr.bf16.mxu0 %v304_v12 }
  0x1f   :  { %p376_p11 = por %p375_p10, %p374_p9 }
  0x21   :  { %307 = vmatpush3.bf16.msra.mxu0 %v304_v12  ;;  %p377_p12 = pnand %p376_p11, %p370_p8 }
  0x22   :  { %309 = vmatprep.subr.bf16.mxu0 %v308_v15 }
  0x25   :  { %311 = vmatpush3.bf16.msra.mxu0 %v308_v15 }
  0x26   :  { %313 = vmatprep.subr.bf16.mxu0 %v312_v18 }
  0x29   :  { %315 = vmatpush3.bf16.msra.mxu0 %v312_v18 }
  0x2a   :  { %317 = vmatprep.subr.bf16.mxu0 %v316_v21 }
  0x2d   :  { %319 = vmatpush3.bf16.msra.mxu0 %v316_v21 }
  0x2e   :  { %321 = vmatprep.subr.bf16.mxu0 %v320_v24 }
  0x31   :  { %323 = vmatpush3.bf16.msra.mxu0 %v320_v24 }
  0x32   :  { %325 = vmatprep.subr.bf16.mxu0 %v324_v27 }
  0x35   :  { %327 = vmatpush3.bf16.msra.mxu0 %v324_v27 }
  0x95   :  { %v38_v30 = vpop.permute.xlu0 %37 }
  0x96   :  { %vm42_vm0 = vcmp.eq.s32.totalorder %v35_v29, %v38_v30 }
  0x97   :  { %293 = vmatprep.mubr.msk.f32.mxu0 %vm42_vm0, %v423_v31 }
  0x99   :  { %v41_v32 = vpop.permute.xlu0 %40 }
  0x9a   :  { %vm43_vm1 = vcmp.eq.s32.totalorder %v35_v29, %v41_v32 }
  0x9b   :  { %294 = vmatmul.mubr.msk.f32.vlgmr.msra.gmra.mrb[0].mxu0 %vm43_vm1, %v423_v31 }
  0x9d   :  { %v168_v46 = vpop.permute.xlu0 %167 }
  0x9e   :  { %vm172_vm3 = vcmp.eq.s32.totalorder %v35_v29, %v168_v46 }
 0x16e   :  { %v295_v33 = vpop.f32.mrb[0].mxu0 }
 0x16f   :  { %140 = vst [vmem:[#allocation5 + $0x8] sm:$0xff] %v295_v33  ;;  %v130_v34 = vpop.f32.mrb[1].mxu0  ;;  %v143_v35 = vsel %vm141_vm2, %v295_v33, -inf }
 0x170   :  { %139 = vst [vmem:[#allocation5] sm:$0xff] %v130_v34  ;;  %146 = vmax.xlane.f32.xlu1 %v143_v35  ;;  %v142_v36 = vsel %vm141_vm2, %v130_v34, -inf  ;;  %v174_v48 = vsel %vm172_vm3, %v130_v34, 0.0 }
 0x174   :  { %144 = vmax.xlane.f32.xlu1 %v142_v36 }
 0x185   :  { %170 = vperm.xlu1 %338, %v165_v37  }
 0x1fd   :  { %v147_v38 = vpop.xlane.xlu1 %146 }
 0x1fe   :  { %v149_v39 = vsub.f32 %v143_v35, %v147_v38 }
 0x200   :  { %v152_v40 = vmul.f32 1.442695, %v149_v39 }
 0x201   :  { %v145_v41 = vpop.xlane.xlu1 %144 }
 0x202   :  { %339 = vpow2.f32 %v152_v40  ;;  %v148_v42 = vsub.f32 %v142_v36, %v145_v41 }
 0x204   :  { %v150_v43 = vmul.f32 1.442695, %v148_v42 }
 0x205   :  { %v171_v47 = vpop.permute.xlu1 %170 }
 0x206   :  { %341 = vpow2.f32 %v150_v43  ;;  %vm173_vm4 = vcmp.eq.s32.totalorder %v35_v29, %v171_v47 }
 0x207   :  { %v175_v49 = vsel %vm173_vm4, %v295_v33, 0.0 }
 0x20c   :  { %v340_v44 = vpop.eup %339 }
 0x20d   :  { %156 = vadd.xlane.f32.xlu1 %v340_v44 }
 0x210   :  { %v342_v45 = vpop.eup %341 }
 0x211   :  { %154 = vadd.xlane.f32.xlu0 %v342_v45 }
 0x215   :  { %176 = vadd.xlane.f32.xlu0 %v174_v48 }
 0x219   :  { %178 = vadd.xlane.f32.xlu0 %v175_v49 }
 0x29a   :  { %v157_v50 = vpop.xlane.xlu1 %156 }
 0x29b   :  { %343 = vlog2.f32 %v157_v50 }
 0x29e   :  { %v155_v51 = vpop.xlane.xlu0 %154 }
 0x29f   :  { %345 = vlog2.f32 %v155_v51 }
 0x2a2   :  { %v177_v53 = vpop.xlane.xlu0 %176 }
 0x2a5   :  { %v344_v52 = vpop.eup %343 }
 0x2a6   :  { %v161_v54 = vmul.f32 0.6931472, %v344_v52  ;;  %v179_v58 = vpop.xlane.xlu0 %178 }
 0x2a8   :  { %v163_v55 = vadd.f32 %v161_v54, %v147_v38 }
 0x2a9   :  { %v346_v56 = vpop.eup %345 }
 0x2aa   :  { %v159_v57 = vmul.f32 0.6931472, %v346_v56  ;;  %v190_v60 = vsub.f32 %v163_v55, %v179_v58 }
 0x2ac   :  { %v162_v59 = vadd.f32 %v159_v57, %v145_v41  ;;  %v195_v63 = vsel %vm193_vm5, %v190_v60, 0.0 }
 0x2ae   :  { %v189_v61 = vsub.f32 %v162_v59, %v177_v53 }
 0x2b0   :  { %v194_v62 = vsel %vm193_vm5, %v189_v61, 0.0 }
 0x2b1   :  { %v196_v0 = vadd.f32 %v195_v63, %v194_v62 }
 0x2b3   :  { %197 = vadd.xlane.f32.xlu0 %v196_v0 }
 0x2b4   :  { %380 = shalt.err (!%p377_p12)
}
 0x2b5   :  { %s381_s13 = scalar_lea.hbm %s508_s3, 256 }
 0x2b6   :  { %p382_p13 = scmp.ne.s32.totalorder %s508_s3, %s381_s13  ;;  %p385_p0 = scmp.lt.u32.totalorder %s381_s13, %s508_s3 }
 0x2b8   :  { %p387_p1 = pnand %p385_p0, %p382_p13 }
 0x2ba   :  { %390 = shalt.err (!%p387_p1)
}
 0x2bb   :  { %219 = dma.vmem_to_hbm [thread:$0]  %s214_s9, 256, %s508_s3, [#allocation4], %s420_s25, %s420_s25, %s421_s26  }
 0x2bc   :  { %s425_s20 = smov [#allocation6]  }
 0x2bd   :  { %s226_s21 = sshll.u32 %s425_s20, 4  ;;  %s227_s21 = int_to_ptr.vmem [resolvable:$true] %s226_s21 }
 0x2be   :  { %s391_s23 = scalar_lea.vmem %s227_s21, 128  ;;  %p396_p3 = scmp.lt.s32.totalorder %s227_s21, %s227_s21 }
 0x2bf   :  { %p392_p2 = scmp.ne.s32.totalorder %s227_s21, %s391_s23  ;;  %p397_p4 = scmp.lt.s32.totalorder %s391_s23, %s391_s23 }
 0x2c1   :  { %p398_p5 = por %p397_p4, %p396_p3 }
 0x2c3   :  { %p399_p6 = pnand %p398_p5, %p392_p2 }
 0x340   :  { %v198_v1 = vpop.xlane.xlu0 %197 }
 0x341   :  { %v199_v2 = vrot.slane %v198_v1, 4 }
 0x343   :  { %v200_v3 = vadd.f32 %v199_v2, %v198_v1 }
 0x345   :  { %v201_v4 = vrot.slane %v200_v3, 2 }
 0x347   :  { %v202_v5 = vadd.f32 %v201_v4, %v200_v3 }
 0x349   :  { %v203_v6 = vrot.slane %v202_v5, 1 }
 0x34b   :  { %v204_v7 = vadd.f32 %v203_v6, %v202_v5 }
 0x34d   :  { %328 = vpush %v204_v7 }
 0x37e   :  { %s329_s22 = spop %328 }
 0x37f   :  { %v206_v8 = vstv %s329_s22 }
 0x380   :  { %207 = vst [vmem:[#allocation6] sm:$0xff] %v206_v8 }
 0x381   :  { %402 = shalt.err (!%p399_p6)
}
 0x382   :  { %s403_s25 = scalar_lea.hbm %s509_s4, 128 }
 0x383   :  { %p404_p7 = scmp.ne.s32.totalorder %s509_s4, %s403_s25  ;;  %p407_p8 = scmp.lt.u32.totalorder %s403_s25, %s509_s4 }
 0x385   :  { %p409_p9 = pnand %p407_p8, %p404_p7 }
 0x387   :  { %412 = shalt.err (!%p409_p9)
}
 0x388   :  { %229 = dma.vmem_to_hbm [thread:$0]  %s227_s21, 128, %s509_s4, [#allocation7]  }
 0x389   :  { %415 = dma.done.wait [#allocation4], 256  }
 0x38a   :  { %416 = vsyncadd [#allocation4], 4294967040 }
 0x38b   :  { %417 = dma.done.wait [#allocation7], 128  }
 0x38c   :  { %418 = vsyncadd [#allocation7], 4294967168 }
 0x38d   :  { %236 = vsyncpa [#allocation3], 1 }
 0x38e   :  { %237 = vsyncpa [#allocation4], 1 }
 0x38f   :  { %238 = vsyncpa [#allocation7], 1 }

</bundles_post_ra>
